<compile_context>
chip_gen: v5e
topology: v5e:2x2
jax: 0.10.0
libtpu: 0.0.40
codegen_flags: <defaults>
</compile_context>

<pallas_src>
import jax
import jax.numpy as jnp
from jax.experimental import pallas as pl
from jax.experimental.pallas import tpu as pltpu

_LANES = 128
# If all operands + outputs fit well inside scoped VMEM (16 MiB default on v5e, 32 MiB on
# v6e/v7x), skip the grid entirely and run one whole-array block.
_SMALL_PATH_BYTES = 16 << 20
_VMEM_LIMIT_BYTES = 32 << 20   # explicit so v5e (16 MiB default scoped) doesn't OOM


def _round_up(n, m):
    return ((n + m - 1) // m) * m


# ---------------------------------------------------------------------------
# Grid-less whole-array kernel (small shapes): logits = x @ W + b, probs = sigmoid
# ---------------------------------------------------------------------------
def _small_linear_kernel(x_ref, w_ref, b_ref, logits_ref, probs_ref):
    x_bf = x_ref[...].astype(jnp.bfloat16)              # VPU cast; keeps HBM read f32-once
    logits = (
        jnp.dot(x_bf, w_ref[...], preferred_element_type=jnp.float32) + b_ref[...]
    )
    logits_ref[...] = logits
    probs_ref[...] = jax.nn.sigmoid(logits)             # EUP — free while MXU-bound


def _small_linear(x, w_pad, b_pad):
    B = x.shape[0]
    n_pad = w_pad.shape[1]
    return pl.pallas_call(
        _small_linear_kernel,
        out_shape=(
            jax.ShapeDtypeStruct((B, n_pad), jnp.float32),
            jax.ShapeDtypeStruct((B, n_pad), jnp.float32),
        ),
        in_specs=[
            pl.BlockSpec(memory_space=pltpu.MemorySpace.VMEM),
            pl.BlockSpec(memory_space=pltpu.MemorySpace.VMEM),
            pl.BlockSpec(memory_space=pltpu.MemorySpace.VMEM),
        ],
        out_specs=(
            pl.BlockSpec(memory_space=pltpu.MemorySpace.VMEM),
            pl.BlockSpec(memory_space=pltpu.MemorySpace.VMEM),
        ),
        compiler_params=pltpu.CompilerParams(vmem_limit_bytes=_VMEM_LIMIT_BYTES),
    )(x, w_pad, b_pad)


# ---------------------------------------------------------------------------
# Tiled (M, N, K) kernel: K last, accumulate directly into the resident output block
# ---------------------------------------------------------------------------
def _tiled_linear_kernel(x_ref, w_ref, b_ref, logits_ref, probs_ref):
    k = pl.program_id(2)
    part = jnp.dot(
        x_ref[...].astype(jnp.bfloat16), w_ref[...],
        preferred_element_type=jnp.float32,
    )

    @pl.when(k == 0)
    def _():
        logits_ref[...] = part

    @pl.when(k != 0)
    def _():
        logits_ref[...] += part

    @pl.when(k == pl.num_programs(2) - 1)
    def _():
        logits = logits_ref[...] + b_ref[...]
        logits_ref[...] = logits
        probs_ref[...] = jax.nn.sigmoid(logits)


def _tiled_linear(x, w_pad, b_pad, *, tm=256, tn=256, tk=512):
    B, K = x.shape
    n_pad = w_pad.shape[1]                 # already a multiple of 128 (lane-dense)

    tn = min(tn, n_pad)                    # n_pad is a multiple of 128
    tm = min(tm, _round_up(B, 8))
    tk = min(tk, _round_up(K, 128))

    # Zero-pad the reduction dim ONLY if needed: garbage in K would contaminate the
    # accumulation.  Partial M / N blocks are safe (out-of-bounds rows/cols are dropped
    # on writeback and never read downstream), so no M padding and no out[:B] slice.
    if K % tk != 0:
        k_full = _round_up(K, tk)
        x = jnp.pad(x, ((0, 0), (0, k_full - K)))
        w_pad = jnp.pad(w_pad, ((0, k_full - K), (0, 0)))
        K = k_full

    m_tiles = pl.cdiv(B, tm)
    n_tiles = pl.cdiv(n_pad, tn)
    k_tiles = K // tk

    # v7x has 2 TensorCores: keep the leading "parallel" grid axis even when possible so
    # the cores split the work evenly.
    m_first = not (m_tiles % 2 == 1 and n_tiles % 2 == 0)
    if m_first:
        grid = (m_tiles, n_tiles, k_tiles)
        x_map = lambda i, j, k: (i, k)
        w_map = lambda i, j, k: (k, j)
        b_map = lambda i, j, k: (0, j)
        o_map = lambda i, j, k: (i, j)
    else:
        grid = (n_tiles, m_tiles, k_tiles)
        x_map = lambda j, i, k: (i, k)
        w_map = lambda j, i, k: (k, j)
        b_map = lambda j, i, k: (0, j)
        o_map = lambda j, i, k: (i, j)

    return pl.pallas_call(
        _tiled_linear_kernel,
        out_shape=(
            jax.ShapeDtypeStruct((B, n_pad), jnp.float32),
            jax.ShapeDtypeStruct((B, n_pad), jnp.float32),
        ),
        grid_spec=pltpu.PrefetchScalarGridSpec(
            num_scalar_prefetch=0,
            grid=grid,
            in_specs=[
                pl.BlockSpec((tm, tk), x_map),
                pl.BlockSpec((tk, tn), w_map),
                pl.BlockSpec((1, tn), b_map),
            ],
            out_specs=(
                pl.BlockSpec((tm, tn), o_map),
                pl.BlockSpec((tm, tn), o_map),
            ),
        ),
        compiler_params=pltpu.CompilerParams(
            dimension_semantics=("parallel", "parallel", "arbitrary"),
            vmem_limit_bytes=_VMEM_LIMIT_BYTES,
        ),
    )(x, w_pad, b_pad)


def linear_forward(x, w_pad, b_pad):
    """x: (B,K) f32; w_pad: (K,N_pad) bf16; b_pad: (1,N_pad) f32 -> (logits, probs) (B,N_pad) f32."""
    B, K = x.shape
    n_pad = w_pad.shape[1]
    footprint = 4 * B * K + 2 * K * n_pad + 8 * B * n_pad + 4 * n_pad
    if footprint <= _SMALL_PATH_BYTES:
        return _small_linear(x, w_pad, b_pad)
    return _tiled_linear(x, w_pad, b_pad)


# ---------------------------------------------------------------------------
# FixedBernoulli distribution semantics (plain JAX glue on kernel outputs)
# ---------------------------------------------------------------------------
class FixedBernoulli:
    def __init__(self, logits, probs=None):
        self.logits = logits
        self._probs = probs                 # fused sigmoid from the kernel when available

    @property
    def probs(self):
        if self._probs is None:
            self._probs = jax.nn.sigmoid(self.logits)
        return self._probs

    def log_probs(self, actions):
        # log p(a) = -softplus(-l)*a - softplus(l)*(1-a); per-sample sum, keepdim.
        l = self.logits
        lp = -(jax.nn.softplus(-l) * actions + jax.nn.softplus(l) * (1.0 - actions))
        return lp.reshape(actions.shape[0], -1).sum(-1)[:, None]

    def entropy(self):
        return (jax.nn.softplus(self.logits) - self.probs * self.logits).sum(-1)

    def mode(self):
        return (self.probs > 0.5).astype(jnp.float32)


# ---------------------------------------------------------------------------
# Bernoulli module: orthogonal-init linear -> FixedBernoulli(logits, probs)
# ---------------------------------------------------------------------------
class Bernoulli:
    def __init__(self, num_inputs, num_outputs, key):
        # Deterministic orthogonal init (gain=1), bias = 0 — mirrors
        # nn.init.orthogonal_ / nn.init.constant_(0) in the PyTorch module.
        a = jax.random.normal(key, (num_outputs, num_inputs), dtype=jnp.float32)
        if num_outputs < num_inputs:
            q, r = jnp.linalg.qr(a.T)
            d = jnp.diag(r)
            q = q * jnp.where(d >= 0, 1.0, -1.0)   # avoid sign(0)==0 zeroing a column
            w = q.T                                # (num_outputs, num_inputs)
        else:
            q, r = jnp.linalg.qr(a)
            d = jnp.diag(r)
            q = q * jnp.where(d >= 0, 1.0, -1.0)
            w = q
        self.num_outputs = num_outputs
        self.w_t = jnp.asarray(w.T, dtype=jnp.float32)        # (num_inputs, num_outputs), f32 reference
        self.b = jnp.zeros((num_outputs,), dtype=jnp.float32)

        # Pad to a lane-dense output width ONCE at init (unmasked full-vreg stores) and
        # store the weight in bf16 so the MXU runs at bf16 peak with halved HBM traffic.
        n_pad = _round_up(num_outputs, _LANES)
        self.w_t_pad = jnp.pad(
            self.w_t, ((0, 0), (0, n_pad - num_outputs))
        ).astype(jnp.bfloat16)
        self.b_pad = jnp.pad(self.b, (0, n_pad - num_outputs)).reshape(1, n_pad)

    def __call__(self, x):
        logits_pad, probs_pad = linear_forward(x, self.w_t_pad, self.b_pad)
        n = self.num_outputs
        if n == logits_pad.shape[1]:
            return FixedBernoulli(logits=logits_pad, probs=probs_pad)
        return FixedBernoulli(logits=logits_pad[:, :n], probs=probs_pad[:, :n])


if __name__ == "__main__":
    key = jax.random.PRNGKey(0)
    k_w, k_x, k_a, k_w2, k_x2 = jax.random.split(key, 5)

    # ---- PPO head shapes: (B=2, 32) -> 8  (grid-less resident-VMEM path)
    B, num_inputs, num_outputs = 2, 32, 8
    module = Bernoulli(num_inputs, num_outputs, k_w)
    x = jax.random.normal(k_x, (B, num_inputs), dtype=jnp.float32)

    dist = module(x)
    jax.block_until_ready(dist.logits)

    # Reference with the same bf16 operands the MXU sees (f32 accumulation), plus a
    # looser sanity check against the pure-f32 linear.
    ref_bf16 = (
        jnp.dot(x.astype(jnp.bfloat16), module.w_t_pad[:, :num_outputs],
                preferred_element_type=jnp.float32)
        + module.b
    )
    ref_f32 = x @ module.w_t + module.b
    assert dist.logits.shape == (B, num_outputs)
    assert jnp.allclose(dist.logits, ref_bf16, atol=1e-4, rtol=1e-4), "small-path logits mismatch"
    assert jnp.allclose(dist.logits, ref_f32, atol=5e-2, rtol=5e-2), "small-path f32 drift"
    assert jnp.allclose(dist.probs, jax.nn.sigmoid(dist.logits), atol=1e-4), "probs mismatch"

    actions = (jax.random.uniform(k_a, (B, num_outputs)) > 0.5).astype(jnp.float32)
    lp = jax.block_until_ready(dist.log_probs(actions))
    ent = jax.block_until_ready(dist.entropy())
    mode = jax.block_until_ready(dist.mode())
    assert lp.shape == (B, 1) and ent.shape == (B,) and mode.shape == (B, num_outputs)

    # ---- exercise the tiled (M, N, K) kernel directly at a modest size
    # (the footprint heuristic would route this through the small path in real use)
    Bb, Kb, Nb = 384, 1024, 200
    big = Bernoulli(Kb, Nb, k_w2)
    xb = jax.random.normal(k_x2, (Bb, Kb), dtype=jnp.float32)
    logits_pad, probs_pad = _tiled_linear(xb, big.w_t_pad, big.b_pad)
    jax.block_until_ready(logits_pad)

    ref_big_bf16 = (
        jnp.dot(xb.astype(jnp.bfloat16), big.w_t_pad, preferred_element_type=jnp.float32)
        + big.b_pad
    )
    ref_big_f32 = jnp.dot(xb, big.w_t, precision=jax.lax.Precision.HIGHEST) + big.b
    assert logits_pad.shape == (Bb, big.w_t_pad.shape[1])
    assert jnp.allclose(logits_pad, ref_big_bf16, atol=5e-3, rtol=5e-3), "tiled-path logits mismatch"
    assert jnp.allclose(logits_pad[:, :Nb], ref_big_f32, atol=5e-2, rtol=5e-2), "tiled-path f32 drift"
    assert jnp.allclose(probs_pad, jax.nn.sigmoid(logits_pad), atol=1e-4), "tiled-path probs mismatch"

    # ---- same shapes through the module / dispatch (small path, fused probs)
    big_dist = big(xb)
    jax.block_until_ready(big_dist.logits)
    assert big_dist.logits.shape == (Bb, Nb)
    assert jnp.allclose(big_dist.logits, ref_big_bf16[:, :Nb], atol=5e-3, rtol=5e-3), "dispatch mismatch"

    # TODO(synk): torch.distributions.Bernoulli.sample() (RNG draw) is not implemented;
    # the PPO forward pass only needs logits/probs/log_probs/entropy/mode.
    print("KERNEL_OK")
</pallas_src>

<mosaic_0001>
module attributes {stable_mosaic.version = 11 : i64} {
  func.func @_small_linear_kernel(%arg0: memref<2x32xf32, #tpu.memory_space<vmem>>, %arg1: memref<32x128xbf16, #tpu.memory_space<vmem>>, %arg2: memref<1x128xf32, #tpu.memory_space<vmem>>, %arg3: memref<2x128xf32, #tpu.memory_space<vmem>>, %arg4: memref<2x128xf32, #tpu.memory_space<vmem>>) attributes {dimension_semantics = [], scalar_prefetch = 0 : i64, scratch_operands = 0 : i64, tpu.core_type = #tpu.core_type<tc>} {
    %c0 = arith.constant 0 : index
    %c0_0 = arith.constant 0 : index
    %0 = vector.load %arg0[%c0, %c0_0] : memref<2x32xf32, #tpu.memory_space<vmem>>, vector<2x32xf32>
    %1 = arith.truncf %0 : vector<2x32xf32> to vector<2x32xbf16>
    %c0_1 = arith.constant 0 : index
    %c0_2 = arith.constant 0 : index
    %2 = vector.load %arg1[%c0_1, %c0_2] : memref<32x128xbf16, #tpu.memory_space<vmem>>, vector<32x128xbf16>
    %cst = arith.constant dense<0.000000e+00> : vector<2x128xf32>
    %3 = tpu.matmul %1, %2, %cst {dimension_numbers = #tpu.dot_dimension_numbers<[1], [0], [0], [1], [0, 0, 1, 1], [], []>} : vector<2x32xbf16>, vector<32x128xbf16>, vector<2x128xf32> -> vector<2x128xf32>
    %c0_3 = arith.constant 0 : index
    %c0_4 = arith.constant 0 : index
    %4 = vector.load %arg2[%c0_3, %c0_4] : memref<1x128xf32, #tpu.memory_space<vmem>>, vector<1x128xf32>
    %5 = vector.broadcast %4 : vector<1x128xf32> to vector<2x128xf32>
    %6 = arith.addf %3, %5 : vector<2x128xf32>
    %c0_5 = arith.constant 0 : index
    %c0_6 = arith.constant 0 : index
    %7 = vector.load %arg3[%c0_5, %c0_6] : memref<2x128xf32, #tpu.memory_space<vmem>>, vector<2x128xf32>
    tpu.vector_store %arg3[%c0_5, %c0_6], %6 {strides = array<i32>} : memref<2x128xf32, #tpu.memory_space<vmem>>, vector<2x128xf32>,
    %8 = arith.negf %6 : vector<2x128xf32>
    %9 = math.exp %8 : vector<2x128xf32>
    %cst_7 = arith.constant 1.000000e+00 : f32
    %10 = vector.broadcast %cst_7 : f32 to vector<2x128xf32>
    %11 = arith.addf %10, %9 : vector<2x128xf32>
    %12 = arith.divf %10, %11 : vector<2x128xf32>
    %c0_8 = arith.constant 0 : index
    %c0_9 = arith.constant 0 : index
    %13 = vector.load %arg4[%c0_8, %c0_9] : memref<2x128xf32, #tpu.memory_space<vmem>>, vector<2x128xf32>
    tpu.vector_store %arg4[%c0_8, %c0_9], %12 {strides = array<i32>} : memref<2x128xf32, #tpu.memory_space<vmem>>, vector<2x128xf32>,
    return
  }
}

</mosaic_0001>

<bundles_post_ra>
// kernel: tpu_custom_call.1
= control target key start
LH: loop header
LB: loop body
LE: loop exit
PB: predicated region body
PF: predicated region fallthrough
CT: control target
= control target key end

     0   :  { %10 = vsyncpa [#allocation3], 0  ;;  %s316_s0 = inlined_call_operand.hbm [shape: f32[2,32], index: 0, kind: input, shape index: {}]   ;;  %s317_s1 = inlined_call_operand.hbm [shape: bf16[32,128], index: 1, kind: input, shape index: {}]   ;;  %s318_s2 = inlined_call_operand.vmem [shape: f32[1,128], index: 2, kind: input, shape index: {}]   ;;  %s319_s3 = inlined_call_operand.hbm [shape: f32[2,128], index: 3, kind: output, shape index: {0}]   ;;  %s320_s4 = inlined_call_operand.hbm [shape: f32[2,128], index: 4, kind: output, shape index: {1}]  }
   0x1   :  { %11 = vsyncpa [#allocation6], 0 }
   0x2   :  { %12 = vsyncpa [#allocation4], 0 }
   0x3   :  { %13 = vsyncpa [#allocation9], 0  ;;  %s19_s17 = sshll.u32 %s316_s0, 4  ;;  %s270_s18 = smov [#allocation2]   ;;  %s20_s17 = int_to_ptr.hbm [resolvable:$true] %s19_s17 }
   0x4   :  { %s21_s19 = sshll.u32 %s270_s18, 4  ;;  %s29_s22 = sshll.u32 %s317_s1, 4  ;;  %s22_s19 = int_to_ptr.vmem [resolvable:$true] %s21_s19  ;;  %s30_s22 = int_to_ptr.hbm [resolvable:$true] %s29_s22 }
   0x5   :  { %24 = dma.hbm_to_vmem [thread:$0]  %s20_s17, 32, %s22_s19, [#allocation3]  }
   0x6   :  { %s271_s23 = smov [#allocation5]   ;;  %s272_s25 = smov 64  }
   0x7   :  { %s31_s24 = sshll.u32 %s271_s23, 4  ;;  %s273_s26 = smov 4   ;;  %s32_s24 = int_to_ptr.vmem [resolvable:$true] %s31_s24 }
   0x8   :  { %37 = dma.hbm_to_vmem [thread:$0]  %s30_s22, 256, %s32_s24, [#allocation6], %s272_s25, %s272_s25, %s273_s26  }
   0x9   :  { %262 = dma.done.wait [#allocation3], 32  }
   0xa   :  { %263 = vsyncadd [#allocation3], 4294967264 }
   0xb   :  { %264 = dma.done.wait [#allocation6], 256  }
   0xc   :  { %265 = vsyncadd [#allocation6], 4294967040  ;;  %v154_v0 = vld [vmem:[#allocation5 + $0x8] sm:$0xff]  ;;  %v153_v1 = vld [vmem:[#allocation5] sm:$0xff]  ;;  %vm71_vm0 = vcmask 261120   ;;  %s274_s27 = smov [#allocation7]  }
   0xd   :  { %81 = vmatpush.bf16.msra.mxu0 %v154_v0  ;;  %v49_v2 = vld [vmem:[#allocation2] sm:$0x3]  ;;  %s114_s28 = sshll.u32 %s274_s27, 4  ;;  %s116_s5 = sshll.u32 %s319_s3, 4  ;;  %s115_s28 = int_to_ptr.vmem [resolvable:$true] %s114_s28  ;;  %s117_s5 = int_to_ptr.hbm [resolvable:$true] %s116_s5 }
   0xe   :  { %v50_v3 = vpack.c.bf16 %v49_v2, %v49_v2  ;;  %v161_v4 = vld [vmem:[%s318_s2] ss:$0 sm:$0xff]  ;;  %s275_s2 = smov [#allocation8]   ;;  %s127_s8 = sshll.u32 %s320_s4, 4  ;;  %s128_s8 = int_to_ptr.hbm [resolvable:$true] %s127_s8 }
   0xf   :  { %s125_s3 = sshll.u32 %s275_s2, 4  ;;  %s126_s3 = int_to_ptr.vmem [resolvable:$true] %s125_s3 }
  0x11   :  { %82 = vmatpush.bf16.msra.mxu0 %v153_v1 }
  0x14   :  { %151 = vmatmul.msk.bf16.vlgmr.msra.gmra.mxu0 %vm71_vm0, %v50_v3 }
  0x91   :  { %v84_v5 = vpop.f32.mrf.mxu0 }
  0x92   :  { %v85_v6 = vadd.f32 %v161_v4, %v84_v5 }
  0x94   :  { %88 = vst [vmem:[#allocation7] sm:$0x3] %v85_v6  ;;  %v152_v7 = vmul.f32 -1.442695, %v85_v6 }
  0x95   :  { %119 = dma.vmem_to_hbm [thread:$0]  %s115_s28, 32, %s117_s5, [#allocation4]  }
  0x96   :  { %162 = vpow2.f32 %v152_v7 }
  0x99   :  { %v86_v8 = vpop.f32.mrf.mxu0 }
  0x9c   :  { %v163_v9 = vpop.eup %162 }
  0x9d   :  { %v92_v10 = vadd.f32 1.0, %v163_v9 }
  0x9f   :  { %164 = vrcp.f32 %v92_v10  ;;  %v104_v14 = vand.u32 2147483648, %v92_v10  ;;  %v102_v16 = vand.u32 2147483647, %v92_v10  ;;  %vm98_vm2 = vweird.f32 %v92_v10 }
  0xa1   :  { %v105_v18 = vor.u32 1.1754944e-38, %v104_v14  ;;  %vm103_vm4 = vcmp.eq.f32.partialorder %v102_v16, 8.507059e+37 }
  0xa5   :  { %v165_v11 = vpop.eup %164 }
  0xa6   :  { %v94_v12 = vmul.f32 %v165_v11, %v92_v10  ;;  %vm99_vm1 = vweird.f32 %v165_v11 }
  0xa7   :  { %vm100_vm3 = vmor %vm98_vm2, %vm99_vm1 }
  0xa8   :  { %v95_v13 = vsub.f32 1.0, %v94_v12 }
  0xaa   :  { %v96_v15 = vmul.f32 %v165_v11, %v95_v13 }
  0xac   :  { %v97_v17 = vadd.f32 %v165_v11, %v96_v15 }
  0xae   :  { %v101_v19 = vsel %vm100_vm3, %v165_v11, %v97_v17 }
  0xaf   :  { %v106_v20 = vsel %vm103_vm4, %v105_v18, %v101_v19 }
  0xb0   :  { %108 = vst [vmem:[#allocation8] sm:$0x3] %v106_v20 }
  0xb1   :  { %130 = dma.vmem_to_hbm [thread:$0]  %s126_s3, 32, %s128_s8, [#allocation9]  }
  0xb2   :  { %266 = dma.done.wait [#allocation4], 32  }
  0xb3   :  { %267 = vsyncadd [#allocation4], 4294967264 }
  0xb4   :  { %268 = dma.done.wait [#allocation9], 32  }
  0xb5   :  { %269 = vsyncadd [#allocation9], 4294967264 }
  0xb6   :  { %139 = vsyncpa [#allocation3], 1 }
  0xb7   :  { %140 = vsyncpa [#allocation6], 1 }
  0xb8   :  { %141 = vsyncpa [#allocation4], 1 }
  0xb9   :  { %142 = vsyncpa [#allocation9], 1 }

</bundles_post_ra>
